<compile_context>
chip_gen: v7x
topology: tpu7x:2x2x1
jax: 0.10.0
libtpu: 0.0.40
codegen_flags: <defaults>
</compile_context>

<pallas_src>
import functools

import jax
import jax.numpy as jnp
from jax import lax
from jax.experimental import pallas as pl
from jax.experimental.pallas import tpu as pltpu

T_FREQ = 64          # number of random frequencies (torch.randn(64, D))
ALPHA = 0.5          # amplitude weight
BETA = 0.5           # phase weight
# threshold = 1 in the reference module -> never applied (no-op), kept out.


# ---------------------------------------------------------------------------
# Fused sin/cos (shared Cody-Waite pi/2 range reduction + Cephes polynomials)
# ---------------------------------------------------------------------------
_TWO_OVER_PI = 0.63661977236758134308
_PIO2_C1 = 1.5703125                       # 2 * Cephes DP1  (few-bit, exact k*C1)
_PIO2_C2 = 4.837512969970703125e-4         # 2 * Cephes DP2
_PIO2_C3 = 7.54978995489188216e-8          # 2 * Cephes DP3


def _sincos(x):
    """Return (sin(x), cos(x)) for f32 x, sharing one range reduction."""
    k = jnp.floor(x * _TWO_OVER_PI + 0.5)
    q = k.astype(jnp.int32)
    r = x - k * _PIO2_C1
    r = r - k * _PIO2_C2
    r = r - k * _PIO2_C3
    z = r * r
    sin_r = ((-1.9515295891e-4 * z + 8.3321608736e-3) * z
             - 1.6666654611e-1) * z * r + r
    cos_r = ((2.443315711809948e-5 * z - 1.388731625493765e-3) * z
             + 4.166664568298827e-2) * z * z - 0.5 * z + 1.0
    swap = (q & 1) != 0                        # odd quadrants swap sin/cos
    s_sel = jnp.where(swap, cos_r, sin_r)
    c_sel = jnp.where(swap, sin_r, cos_r)
    s = jnp.where((q & 2) != 0, -s_sel, s_sel)         # sin < 0 for q in {2,3}
    c = jnp.where(((q + 1) & 2) != 0, -c_sel, c_sel)   # cos < 0 for q in {1,2}
    return s, c


# ---------------------------------------------------------------------------
# Kernel: per-core partial sums of cos/sin of the random projections
# ---------------------------------------------------------------------------
def _cf_partial_kernel(t_ref, x_ref, y_ref, out_ref, *, n_rows, npc, needs_mask):
    c = pl.program_id(0)           # core-split index ("parallel")
    i = pl.program_id(1)           # batch-tile index within this core ("arbitrary")
    bt = x_ref.shape[0]
    tf = t_ref.shape[1]

    @pl.when(i == 0)
    def _init():
        out_ref[...] = jnp.zeros_like(out_ref)

    t = t_ref[...]                                                   # (D, T) resident
    px = jnp.dot(x_ref[...], t, preferred_element_type=jnp.float32)  # (bt, T)
    py = jnp.dot(y_ref[...], t, preferred_element_type=jnp.float32)  # (bt, T)

    if needs_mask:
        g = c * npc + i                     # global batch-tile index (unclamped)
        limit = n_rows - g * bt             # #valid rows in this tile (may be <= 0)
        row = lax.broadcasted_iota(jnp.int32, (bt, tf), 0)
        valid = row < limit
        # Masked rows -> projection 0 -> cos=1 / sin=0 exactly; the wrapper
        # subtracts the (static) masked-row count from the cosine sums.
        px = jnp.where(valid, px, 0.0)
        py = jnp.where(valid, py, 0.0)

    sx, cx = _sincos(px)
    sy, cy = _sincos(py)

    sums = jnp.concatenate(
        [jnp.sum(cx, axis=0, keepdims=True),
         jnp.sum(sx, axis=0, keepdims=True),
         jnp.sum(cy, axis=0, keepdims=True),
         jnp.sum(sy, axis=0, keepdims=True)], axis=0)                # (4, T)
    out_ref[0] += sums


# ---------------------------------------------------------------------------
# Wrapper
# ---------------------------------------------------------------------------
def _vmem_capacity_bytes():
    try:
        return int(pltpu.get_tpu_info().vmem_capacity_bytes)
    except Exception:
        return 64 * 1024 * 1024            # conservative (v7x-sized) fallback


def _choose_tiling(B, D):
    """Pick the batch-tile size and a generation-aware VMEM limit."""
    vmem = _vmem_capacity_bytes()
    # Streamed inputs (x + target, double-buffered) get ~40% of VMEM; the rest is
    # headroom for the resident t tile, intermediates and Mosaic scratch.
    budget = (2 * vmem) // 5
    cap = budget // (16 * D)               # 2 operands x 2 buffers x 4 bytes x D
    cap = (cap // 8) * 8
    if cap >= 128:
        cap = (cap // 128) * 128
    cap = max(8, min(1024, cap))
    b_tile = B if B <= cap else cap        # block == full dim is always legal
    vmem_limit = min((vmem * 3) // 4, 100 * 1024 * 1024)   # ~48 MiB v7x, 96 MiB v5e/v6e
    return b_tile, int(vmem_limit)


def cf_loss(x, target, t, *, alpha=ALPHA, beta=BETA):
    """x, target: (B, D) or (B, C, L); t: (T_FREQ, D). Returns scalar f32 loss."""
    if x.ndim == 3:
        x = x.reshape(x.shape[0], -1)
        target = target.reshape(target.shape[0], -1)
    x = x.astype(jnp.float32)
    target = target.astype(jnp.float32)
    t = t.astype(jnp.float32)

    B, D = x.shape
    T = t.shape[0]
    t_t = jnp.transpose(t)                 # (D, T) — tiny one-time op

    b_tile, vmem_limit = _choose_tiling(B, D)
    nb = -(-B // b_tile)                   # number of real batch tiles
    n_split = 2 if nb >= 2 else 1          # v7x: shard batch tiles over both TCs
    npc = -(-nb // n_split)                # tiles per core
    n_fake = n_split * npc * b_tile - B    # masked rows (contribute cos=1, sin=0)
    needs_mask = n_fake > 0

    def xy_map(c, i):
        g = c * npc + i
        return (jnp.minimum(g, nb - 1), 0)  # clamp: never DMA a fully-OOB block

    kernel = functools.partial(_cf_partial_kernel,
                               n_rows=B, npc=npc, needs_mask=needs_mask)

    n_tiles = n_split * npc
    cost = pl.CostEstimate(
        flops=2 * 2 * n_tiles * b_tile * D * T + 40 * 2 * n_tiles * b_tile * T,
        transcendentals=0,                 # sincos is hand-rolled VPU polynomial work
        bytes_accessed=4 * (2 * B * D + D * T + n_split * 4 * T),
    )

    part = pl.pallas_call(
        kernel,
        out_shape=jax.ShapeDtypeStruct((n_split, 4, T), jnp.float32),
        grid_spec=pltpu.PrefetchScalarGridSpec(
            num_scalar_prefetch=0,
            grid=(n_split, npc),
            in_specs=[
                # t^T: same block every step -> DMA'd once, resident in VMEM.
                pl.BlockSpec((D, T), lambda c, i: (0, 0)),
                # x / target tiles in natural (B, D) layout, double-buffered.
                pl.BlockSpec((b_tile, D), xy_map),
                pl.BlockSpec((b_tile, D), xy_map),
            ],
            out_specs=pl.BlockSpec((1, 4, T), lambda c, i: (c, 0, 0)),
        ),
        compiler_params=pltpu.CompilerParams(
            dimension_semantics=("parallel", "arbitrary"),
            vmem_limit_bytes=vmem_limit,
        ),
        cost_estimate=cost,
    )(t_t, x, target)

    # Tiny nonlinear finalize (64 frequencies) in plain JAX.
    sums = jnp.sum(part, axis=0)           # (4, T)
    inv_b = 1.0 / float(B)
    x_real = (sums[0] - float(n_fake)) * inv_b
    x_imag = sums[1] * inv_b
    y_real = (sums[2] - float(n_fake)) * inv_b
    y_imag = sums[3] * inv_b

    x_norm = jnp.sqrt(x_real * x_real + x_imag * x_imag)
    y_norm = jnp.sqrt(y_real * y_real + y_imag * y_imag)
    amp_diff = y_norm - x_norm
    loss_amp = amp_diff * amp_diff
    loss_pha = 2.0 * (y_norm * x_norm - x_real * y_real - x_imag * y_imag)
    loss_pha = jnp.maximum(loss_pha, 1e-12)
    return jnp.mean(jnp.sqrt(alpha * loss_amp + beta * loss_pha))


def cf_loss_ref(x, target, t):
    """Pure-JAX reference mirroring the PyTorch forward."""
    if x.ndim == 3:
        x = x.reshape(x.shape[0], -1)
        target = target.reshape(target.shape[0], -1)
    t_x = t @ x.T
    t_y = t @ target.T
    xr, xi = jnp.mean(jnp.cos(t_x), axis=1), jnp.mean(jnp.sin(t_x), axis=1)
    yr, yi = jnp.mean(jnp.cos(t_y), axis=1), jnp.mean(jnp.sin(t_y), axis=1)
    xn = jnp.sqrt(xr * xr + xi * xi)
    yn = jnp.sqrt(yr * yr + yi * yi)
    amp = (yn - xn) ** 2
    pha = jnp.maximum(2.0 * (yn * xn - xr * yr - xi * yi), 1e-12)
    return jnp.mean(jnp.sqrt(ALPHA * amp + BETA * pha))


if __name__ == "__main__":
    key = jax.random.PRNGKey(0)
    kx, kt, kf, kx2, kt2 = jax.random.split(key, 5)

    # Case 1: 3-D input (B, C, L) -> flattened (B, 256); single tile, no masking.
    B, C, L = 4, 4, 64
    D = C * L
    x = jax.random.normal(kx, (B, C, L), dtype=jnp.float32)
    target = jax.random.normal(kt, (B, C, L), dtype=jnp.float32)
    # Deterministic random frequencies (torch.randn(64, D) equivalent).
    t = jax.random.normal(kf, (T_FREQ, D), dtype=jnp.float32)

    loss = jax.block_until_ready(cf_loss(x, target, t))
    ref = jax.block_until_ready(cf_loss_ref(x, target, t))
    assert jnp.isfinite(loss), "loss is not finite"
    assert jnp.allclose(loss, ref, rtol=5e-5, atol=5e-5), (loss, ref)

    # Case 2: 2-D input with a batch larger than one tile -> exercises the batch
    # grid, the two-way core split and the ragged-tile mask.
    B2 = 1500
    x2 = jax.random.normal(kx2, (B2, D), dtype=jnp.float32)
    y2 = jax.random.normal(kt2, (B2, D), dtype=jnp.float32)
    loss2 = jax.block_until_ready(cf_loss(x2, y2, t))
    ref2 = jax.block_until_ready(cf_loss_ref(x2, y2, t))
    assert jnp.isfinite(loss2), "loss2 is not finite"
    assert jnp.allclose(loss2, ref2, rtol=5e-5, atol=5e-5), (loss2, ref2)

    print("KERNEL_OK")
</pallas_src>

<mosaic_0001>
module attributes {stable_mosaic.version = 11 : i64} {
  func.func @_cf_partial_kernel(%arg0: i32, %arg1: i32, %arg2: memref<256x64xf32, #tpu.memory_space<vmem>>, %arg3: memref<4x256xf32, #tpu.memory_space<vmem>>, %arg4: memref<4x256xf32, #tpu.memory_space<vmem>>, %arg5: memref<1x4x64xf32, #tpu.memory_space<vmem>>) attributes {dimension_semantics = [#tpu.dimension_semantics<parallel>, #tpu.dimension_semantics<arbitrary>], iteration_bounds = array<i64: 1, 1>, scalar_prefetch = 0 : i64, scratch_operands = 0 : i64, tpu.core_type = #tpu.core_type<tc>, window_params = [{pipeline_mode = #tpu.pipeline_mode<synchronous>, transform_indices = @transform_0, window_bounds = array<i64: 256, 64>}, {transform_indices = @transform_1, window_bounds = array<i64: 4, 256>}, {transform_indices = @transform_2, window_bounds = array<i64: 4, 256>}, {transform_indices = @transform_3, window_bounds = array<i64: 1, 4, 64>}]} {
    %c0_i32 = arith.constant 0 : i32
    %0 = arith.cmpi eq, %arg1, %c0_i32 : i32
    %1 = arith.extui %0 : i1 to i32
    %c0_i32_0 = arith.constant 0 : i32
    %2 = arith.cmpi ne, %1, %c0_i32_0 : i32
    scf.if %2 {
      %cst_59 = arith.constant 0.000000e+00 : f32
      %147 = vector.broadcast %cst_59 : f32 to vector<1x4x64xf32>
      %c0_60 = arith.constant 0 : index
      %c0_61 = arith.constant 0 : index
      %c0_62 = arith.constant 0 : index
      %148 = vector.load %arg5[%c0_60, %c0_61, %c0_62] : memref<1x4x64xf32, #tpu.memory_space<vmem>>, vector<1x4x64xf32>
      tpu.vector_store %arg5[%c0_60, %c0_61, %c0_62], %147 {strides = array<i32>} : memref<1x4x64xf32, #tpu.memory_space<vmem>>, vector<1x4x64xf32>,
    } else {
    }
    %c0 = arith.constant 0 : index
    %c0_1 = arith.constant 0 : index
    %3 = vector.load %arg2[%c0, %c0_1] : memref<256x64xf32, #tpu.memory_space<vmem>>, vector<256x64xf32>
    %c0_2 = arith.constant 0 : index
    %c0_3 = arith.constant 0 : index
    %4 = vector.load %arg3[%c0_2, %c0_3] : memref<4x256xf32, #tpu.memory_space<vmem>>, vector<4x256xf32>
    %cst = arith.constant dense<0.000000e+00> : vector<4x64xf32>
    %5 = tpu.matmul %4, %3, %cst {dimension_numbers = #tpu.dot_dimension_numbers<[1], [0], [0], [1], [0, 0, 1, 1], [], []>} : vector<4x256xf32>, vector<256x64xf32>, vector<4x64xf32> -> vector<4x64xf32>
    %c0_4 = arith.constant 0 : index
    %c0_5 = arith.constant 0 : index
    %6 = vector.load %arg4[%c0_4, %c0_5] : memref<4x256xf32, #tpu.memory_space<vmem>>, vector<4x256xf32>
    %cst_6 = arith.constant dense<0.000000e+00> : vector<4x64xf32>
    %7 = tpu.matmul %6, %3, %cst_6 {dimension_numbers = #tpu.dot_dimension_numbers<[1], [0], [0], [1], [0, 0, 1, 1], [], []>} : vector<4x256xf32>, vector<256x64xf32>, vector<4x64xf32> -> vector<4x64xf32>
    %cst_7 = arith.constant 0.636619746 : f32
    %8 = vector.broadcast %cst_7 : f32 to vector<4x64xf32>
    %9 = arith.mulf %5, %8 : vector<4x64xf32>
    %cst_8 = arith.constant 5.000000e-01 : f32
    %10 = vector.broadcast %cst_8 : f32 to vector<4x64xf32>
    %11 = arith.addf %9, %10 : vector<4x64xf32>
    %12 = math.floor %11 : vector<4x64xf32>
    %13 = arith.fptosi %12 : vector<4x64xf32> to vector<4x64xi32>
    %cst_9 = arith.constant 1.5703125 : f32
    %14 = vector.broadcast %cst_9 : f32 to vector<4x64xf32>
    %15 = arith.mulf %12, %14 : vector<4x64xf32>
    %16 = arith.subf %5, %15 : vector<4x64xf32>
    %cst_10 = arith.constant 4.83751297E-4 : f32
    %17 = vector.broadcast %cst_10 : f32 to vector<4x64xf32>
    %18 = arith.mulf %12, %17 : vector<4x64xf32>
    %19 = arith.subf %16, %18 : vector<4x64xf32>
    %cst_11 = arith.constant 7.549790e-08 : f32
    %20 = vector.broadcast %cst_11 : f32 to vector<4x64xf32>
    %21 = arith.mulf %12, %20 : vector<4x64xf32>
    %22 = arith.subf %19, %21 : vector<4x64xf32>
    %23 = arith.mulf %22, %22 : vector<4x64xf32>
    %cst_12 = arith.constant -1.95152956E-4 : f32
    %24 = vector.broadcast %cst_12 : f32 to vector<4x64xf32>
    %25 = arith.mulf %24, %23 : vector<4x64xf32>
    %cst_13 = arith.constant 0.00833216123 : f32
    %26 = vector.broadcast %cst_13 : f32 to vector<4x64xf32>
    %27 = arith.addf %25, %26 : vector<4x64xf32>
    %28 = arith.mulf %27, %23 : vector<4x64xf32>
    %cst_14 = arith.constant 0.166666552 : f32
    %29 = vector.broadcast %cst_14 : f32 to vector<4x64xf32>
    %30 = arith.subf %28, %29 : vector<4x64xf32>
    %31 = arith.mulf %30, %23 : vector<4x64xf32>
    %32 = arith.mulf %31, %22 : vector<4x64xf32>
    %33 = arith.addf %32, %22 : vector<4x64xf32>
    %cst_15 = arith.constant 2.44331568E-5 : f32
    %34 = vector.broadcast %cst_15 : f32 to vector<4x64xf32>
    %35 = arith.mulf %34, %23 : vector<4x64xf32>
    %cst_16 = arith.constant 0.00138873165 : f32
    %36 = vector.broadcast %cst_16 : f32 to vector<4x64xf32>
    %37 = arith.subf %35, %36 : vector<4x64xf32>
    %38 = arith.mulf %37, %23 : vector<4x64xf32>
    %cst_17 = arith.constant 0.0416666456 : f32
    %39 = vector.broadcast %cst_17 : f32 to vector<4x64xf32>
    %40 = arith.addf %38, %39 : vector<4x64xf32>
    %41 = arith.mulf %40, %23 : vector<4x64xf32>
    %42 = arith.mulf %41, %23 : vector<4x64xf32>
    %cst_18 = arith.constant 5.000000e-01 : f32
    %43 = vector.broadcast %cst_18 : f32 to vector<4x64xf32>
    %44 = arith.mulf %43, %23 : vector<4x64xf32>
    %45 = arith.subf %42, %44 : vector<4x64xf32>
    %cst_19 = arith.constant 1.000000e+00 : f32
    %46 = vector.broadcast %cst_19 : f32 to vector<4x64xf32>
    %47 = arith.addf %45, %46 : vector<4x64xf32>
    %c1_i32 = arith.constant 1 : i32
    %48 = vector.broadcast %c1_i32 : i32 to vector<4x64xi32>
    %49 = arith.andi %13, %48 : vector<4x64xi32>
    %c0_i32_20 = arith.constant 0 : i32
    %50 = vector.broadcast %c0_i32_20 : i32 to vector<4x64xi32>
    %51 = arith.cmpi ne, %49, %50 : vector<4x64xi32>
    %52 = arith.select %51, %47, %33 : vector<4x64xi1>, vector<4x64xf32>
    %53 = arith.select %51, %33, %47 : vector<4x64xi1>, vector<4x64xf32>
    %c2_i32 = arith.constant 2 : i32
    %54 = vector.broadcast %c2_i32 : i32 to vector<4x64xi32>
    %55 = arith.andi %13, %54 : vector<4x64xi32>
    %c0_i32_21 = arith.constant 0 : i32
    %56 = vector.broadcast %c0_i32_21 : i32 to vector<4x64xi32>
    %57 = arith.cmpi ne, %55, %56 : vector<4x64xi32>
    %cst_22 = arith.constant 0.000000e+00 : f32
    %58 = vector.broadcast %cst_22 : f32 to vector<4x64xf32>
    %59 = arith.subf %58, %52 : vector<4x64xf32>
    %60 = arith.select %57, %59, %52 : vector<4x64xi1>, vector<4x64xf32>
    %c1_i32_23 = arith.constant 1 : i32
    %61 = vector.broadcast %c1_i32_23 : i32 to vector<4x64xi32>
    %62 = arith.addi %13, %61 : vector<4x64xi32>
    %c2_i32_24 = arith.constant 2 : i32
    %63 = vector.broadcast %c2_i32_24 : i32 to vector<4x64xi32>
    %64 = arith.andi %62, %63 : vector<4x64xi32>
    %c0_i32_25 = arith.constant 0 : i32
    %65 = vector.broadcast %c0_i32_25 : i32 to vector<4x64xi32>
    %66 = arith.cmpi ne, %64, %65 : vector<4x64xi32>
    %cst_26 = arith.constant 0.000000e+00 : f32
    %67 = vector.broadcast %cst_26 : f32 to vector<4x64xf32>
    %68 = arith.subf %67, %53 : vector<4x64xf32>
    %69 = arith.select %66, %68, %53 : vector<4x64xi1>, vector<4x64xf32>
    %cst_27 = arith.constant 0.636619746 : f32
    %70 = vector.broadcast %cst_27 : f32 to vector<4x64xf32>
    %71 = arith.mulf %7, %70 : vector<4x64xf32>
    %cst_28 = arith.constant 5.000000e-01 : f32
    %72 = vector.broadcast %cst_28 : f32 to vector<4x64xf32>
    %73 = arith.addf %71, %72 : vector<4x64xf32>
    %74 = math.floor %73 : vector<4x64xf32>
    %75 = arith.fptosi %74 : vector<4x64xf32> to vector<4x64xi32>
    %cst_29 = arith.constant 1.5703125 : f32
    %76 = vector.broadcast %cst_29 : f32 to vector<4x64xf32>
    %77 = arith.mulf %74, %76 : vector<4x64xf32>
    %78 = arith.subf %7, %77 : vector<4x64xf32>
    %cst_30 = arith.constant 4.83751297E-4 : f32
    %79 = vector.broadcast %cst_30 : f32 to vector<4x64xf32>
    %80 = arith.mulf %74, %79 : vector<4x64xf32>
    %81 = arith.subf %78, %80 : vector<4x64xf32>
    %cst_31 = arith.constant 7.549790e-08 : f32
    %82 = vector.broadcast %cst_31 : f32 to vector<4x64xf32>
    %83 = arith.mulf %74, %82 : vector<4x64xf32>
    %84 = arith.subf %81, %83 : vector<4x64xf32>
    %85 = arith.mulf %84, %84 : vector<4x64xf32>
    %cst_32 = arith.constant -1.95152956E-4 : f32
    %86 = vector.broadcast %cst_32 : f32 to vector<4x64xf32>
    %87 = arith.mulf %86, %85 : vector<4x64xf32>
    %cst_33 = arith.constant 0.00833216123 : f32
    %88 = vector.broadcast %cst_33 : f32 to vector<4x64xf32>
    %89 = arith.addf %87, %88 : vector<4x64xf32>
    %90 = arith.mulf %89, %85 : vector<4x64xf32>
    %cst_34 = arith.constant 0.166666552 : f32
    %91 = vector.broadcast %cst_34 : f32 to vector<4x64xf32>
    %92 = arith.subf %90, %91 : vector<4x64xf32>
    %93 = arith.mulf %92, %85 : vector<4x64xf32>
    %94 = arith.mulf %93, %84 : vector<4x64xf32>
    %95 = arith.addf %94, %84 : vector<4x64xf32>
    %cst_35 = arith.constant 2.44331568E-5 : f32
    %96 = vector.broadcast %cst_35 : f32 to vector<4x64xf32>
    %97 = arith.mulf %96, %85 : vector<4x64xf32>
    %cst_36 = arith.constant 0.00138873165 : f32
    %98 = vector.broadcast %cst_36 : f32 to vector<4x64xf32>
    %99 = arith.subf %97, %98 : vector<4x64xf32>
    %100 = arith.mulf %99, %85 : vector<4x64xf32>
    %cst_37 = arith.constant 0.0416666456 : f32
    %101 = vector.broadcast %cst_37 : f32 to vector<4x64xf32>
    %102 = arith.addf %100, %101 : vector<4x64xf32>
    %103 = arith.mulf %102, %85 : vector<4x64xf32>
    %104 = arith.mulf %103, %85 : vector<4x64xf32>
    %cst_38 = arith.constant 5.000000e-01 : f32
    %105 = vector.broadcast %cst_38 : f32 to vector<4x64xf32>
    %106 = arith.mulf %105, %85 : vector<4x64xf32>
    %107 = arith.subf %104, %106 : vector<4x64xf32>
    %cst_39 = arith.constant 1.000000e+00 : f32
    %108 = vector.broadcast %cst_39 : f32 to vector<4x64xf32>
    %109 = arith.addf %107, %108 : vector<4x64xf32>
    %c1_i32_40 = arith.constant 1 : i32
    %110 = vector.broadcast %c1_i32_40 : i32 to vector<4x64xi32>
    %111 = arith.andi %75, %110 : vector<4x64xi32>
    %c0_i32_41 = arith.constant 0 : i32
    %112 = vector.broadcast %c0_i32_41 : i32 to vector<4x64xi32>
    %113 = arith.cmpi ne, %111, %112 : vector<4x64xi32>
    %114 = arith.select %113, %109, %95 : vector<4x64xi1>, vector<4x64xf32>
    %115 = arith.select %113, %95, %109 : vector<4x64xi1>, vector<4x64xf32>
    %c2_i32_42 = arith.constant 2 : i32
    %116 = vector.broadcast %c2_i32_42 : i32 to vector<4x64xi32>
    %117 = arith.andi %75, %116 : vector<4x64xi32>
    %c0_i32_43 = arith.constant 0 : i32
    %118 = vector.broadcast %c0_i32_43 : i32 to vector<4x64xi32>
    %119 = arith.cmpi ne, %117, %118 : vector<4x64xi32>
    %cst_44 = arith.constant 0.000000e+00 : f32
    %120 = vector.broadcast %cst_44 : f32 to vector<4x64xf32>
    %121 = arith.subf %120, %114 : vector<4x64xf32>
    %122 = arith.select %119, %121, %114 : vector<4x64xi1>, vector<4x64xf32>
    %c1_i32_45 = arith.constant 1 : i32
    %123 = vector.broadcast %c1_i32_45 : i32 to vector<4x64xi32>
    %124 = arith.addi %75, %123 : vector<4x64xi32>
    %c2_i32_46 = arith.constant 2 : i32
    %125 = vector.broadcast %c2_i32_46 : i32 to vector<4x64xi32>
    %126 = arith.andi %124, %125 : vector<4x64xi32>
    %c0_i32_47 = arith.constant 0 : i32
    %127 = vector.broadcast %c0_i32_47 : i32 to vector<4x64xi32>
    %128 = arith.cmpi ne, %126, %127 : vector<4x64xi32>
    %cst_48 = arith.constant 0.000000e+00 : f32
    %129 = vector.broadcast %cst_48 : f32 to vector<4x64xf32>
    %130 = arith.subf %129, %115 : vector<4x64xf32>
    %131 = arith.select %128, %130, %115 : vector<4x64xi1>, vector<4x64xf32>
    %cst_49 = arith.constant dense<0.000000e+00> : vector<64xf32>
    %132 = vector.multi_reduction <add>, %69, %cst_49 [0] : vector<4x64xf32> to vector<64xf32>
    %133 = vector.shape_cast %132 : vector<64xf32> to vector<1x64xf32>
    %cst_50 = arith.constant dense<0.000000e+00> : vector<64xf32>
    %134 = vector.multi_reduction <add>, %60, %cst_50 [0] : vector<4x64xf32> to vector<64xf32>
    %135 = vector.shape_cast %134 : vector<64xf32> to vector<1x64xf32>
    %cst_51 = arith.constant dense<0.000000e+00> : vector<64xf32>
    %136 = vector.multi_reduction <add>, %131, %cst_51 [0] : vector<4x64xf32> to vector<64xf32>
    %137 = vector.shape_cast %136 : vector<64xf32> to vector<1x64xf32>
    %cst_52 = arith.constant dense<0.000000e+00> : vector<64xf32>
    %138 = vector.multi_reduction <add>, %122, %cst_52 [0] : vector<4x64xf32> to vector<64xf32>
    %139 = vector.shape_cast %138 : vector<64xf32> to vector<1x64xf32>
    %140 = tpu.concatenate %133, %135, %137, %139 in 0 : vector<1x64xf32>, vector<1x64xf32>, vector<1x64xf32>, vector<1x64xf32> -> vector<4x64xf32>
    %c0_53 = arith.constant 0 : index
    %c0_54 = arith.constant 0 : index
    %c0_55 = arith.constant 0 : index
    %141 = vector.load %arg5[%c0_53, %c0_54, %c0_55] : memref<1x4x64xf32, #tpu.memory_space<vmem>>, vector<1x4x64xf32>
    %142 = vector.shape_cast %141 : vector<1x4x64xf32> to vector<4x64xf32>
    %143 = arith.addf %142, %140 : vector<4x64xf32>
    %c0_56 = arith.constant 0 : index
    %c0_57 = arith.constant 0 : index
    %c0_58 = arith.constant 0 : index
    %144 = vector.load %arg5[%c0_56, %c0_57, %c0_58] : memref<1x4x64xf32, #tpu.memory_space<vmem>>, vector<1x4x64xf32>
    %145 = vector.shape_cast %144 : vector<1x4x64xf32> to vector<4x64xf32>
    %146 = vector.shape_cast %143 : vector<4x64xf32> to vector<1x4x64xf32>
    tpu.vector_store %arg5[%c0_56, %c0_57, %c0_58], %146 {strides = array<i32>} : memref<1x4x64xf32, #tpu.memory_space<vmem>>, vector<1x4x64xf32>,
    return
  }
  func.func @transform_0(%arg0: i32, %arg1: i32) -> (i32, i32) {
    %c0_i32 = arith.constant 0 : i32
    %c0_i32_0 = arith.constant 0 : i32
    %c0_i32_1 = arith.constant 0 : i32
    return %c0_i32, %c0_i32_0 : i32, i32
  }
  func.func @transform_1(%arg0: i32, %arg1: i32) -> (i32, i32) {
    %c1_i32 = arith.constant 1 : i32
    %0 = arith.muli %arg0, %c1_i32 : i32
    %1 = arith.addi %0, %arg1 : i32
    %c0_i32 = arith.constant 0 : i32
    %2 = arith.minsi %1, %c0_i32 : i32
    %c0_i32_0 = arith.constant 0 : i32
    %c0_i32_1 = arith.constant 0 : i32
    return %2, %c0_i32_0 : i32, i32
  }
  func.func @transform_2(%arg0: i32, %arg1: i32) -> (i32, i32) {
    %c1_i32 = arith.constant 1 : i32
    %0 = arith.muli %arg0, %c1_i32 : i32
    %1 = arith.addi %0, %arg1 : i32
    %c0_i32 = arith.constant 0 : i32
    %2 = arith.minsi %1, %c0_i32 : i32
    %c0_i32_0 = arith.constant 0 : i32
    %c0_i32_1 = arith.constant 0 : i32
    return %2, %c0_i32_0 : i32, i32
  }
  func.func @transform_3(%arg0: i32, %arg1: i32) -> (i32, i32, i32) {
    %c0_i32 = arith.constant 0 : i32
    %c0_i32_0 = arith.constant 0 : i32
    %c0_i32_1 = arith.constant 0 : i32
    return %arg0, %c0_i32, %c0_i32_0 : i32, i32, i32
  }
}

</mosaic_0001>

<bundles_post_ra>
// kernel: tpu_custom_call.1
= control target key start
LH: loop header
LB: loop body
LE: loop exit
PB: predicated region body
PF: predicated region fallthrough
CT: control target
= control target key end

     0   :  { %s717_s0 = inlined_call_operand.vmem [shape: f32[256,64], index: 0, kind: input, shape index: {}]   ;;  %s718_s1 = inlined_call_operand.vmem [shape: f32[4,256], index: 1, kind: input, shape index: {}]   ;;  %s719_s2 = inlined_call_operand.vmem [shape: f32[4,256], index: 2, kind: input, shape index: {}]   ;;  %s720_s3 = inlined_call_operand.hbm [shape: f32[1,4,64], index: 3, kind: output, shape index: {}]  }
   0x1   :  { %v97_v0 = vld [vmem:[%s717_s0 + $0x80] sm:$0xff]  ;;  %v98_v1 = vld [vmem:[%s717_s0 + $0x88] sm:$0xff]  ;;  %v99_v5 = vld [vmem:[%s717_s0 + $0x90] sm:$0xff] }
   0x2   :  { %v81_v2 = vld [vmem:[%s717_s0] sm:$0xff]  ;;  %v479_v3 = vpack.c.bf16 %v98_v1, %v97_v0  ;;  %v82_v4 = vld [vmem:[%s717_s0 + $0x8] sm:$0xff]  ;;  %v100_v6 = vld [vmem:[%s717_s0 + $0x98] sm:$0xff] }
   0x3   :  { %v481_v7 = vpack.c.bf16 %v82_v4, %v81_v2  ;;  %v483_v8 = vpack.c.bf16 %v100_v6, %v99_v5  ;;  %v83_v9 = vld [vmem:[%s717_s0 + $0x10] sm:$0xff]  ;;  %v84_v10 = vld [vmem:[%s717_s0 + $0x18] sm:$0xff]  ;;  %v101_v11 = vld [vmem:[%s717_s0 + $0xa0] sm:$0xff] }
   0x4   :  { %480 = vmatprep.subr.bf16.mxu0 %v479_v3  ;;  %512 = vmatprep.subr.bf16.mxu1 %v479_v3  ;;  %v102_v12 = vld [vmem:[%s717_s0 + $0xa8] sm:$0xff]  ;;  %v485_v13 = vpack.c.bf16 %v84_v10, %v83_v9  ;;  %v85_v15 = vld [vmem:[%s717_s0 + $0x20] sm:$0xff]  ;;  %v103_v17 = vld [vmem:[%s717_s0 + $0xb0] sm:$0xff] }
   0x5   :  { %482 = vmatpush3.bf16.msra.mxu0 %v481_v7  ;;  %514 = vmatpush3.bf16.msra.mxu1 %v481_v7  ;;  %v487_v14 = vpack.c.bf16 %v102_v12, %v101_v11  ;;  %v86_v16 = vld [vmem:[%s717_s0 + $0x28] sm:$0xff]  ;;  %v104_v18 = vld [vmem:[%s717_s0 + $0xb8] sm:$0xff]  ;;  %v87_v21 = vld [vmem:[%s717_s0 + $0x30] sm:$0xff] }
   0x6   :  { %484 = vmatprep.subr.bf16.mxu0 %v483_v8  ;;  %516 = vmatprep.subr.bf16.mxu1 %v483_v8  ;;  %v489_v19 = vpack.c.bf16 %v86_v16, %v85_v15  ;;  %v491_v20 = vpack.c.bf16 %v104_v18, %v103_v17  ;;  %v88_v22 = vld [vmem:[%s717_s0 + $0x38] sm:$0xff]  ;;  %v105_v23 = vld [vmem:[%s717_s0 + $0xc0] sm:$0xff]  ;;  %v106_v24 = vld [vmem:[%s717_s0 + $0xc8] sm:$0xff] }
   0x7   :  { %v113_v25 = vld [vmem:[%s718_s1] sm:$0xff] }
   0x8   :  { %v115_v26 = vcombine.high %v113_v25, %v113_v25  ;;  %v187_v27 = vld [vmem:[%s719_s2] sm:$0xff] }
   0x9   :  { %486 = vmatpush3.bf16.msra.mxu0 %v485_v13  ;;  %518 = vmatpush3.bf16.msra.mxu1 %v485_v13 }
   0xa   :  { %488 = vmatprep.subr.bf16.mxu0 %v487_v14  ;;  %520 = vmatprep.subr.bf16.mxu1 %v487_v14 }
   0xb   :  { %8 = vsyncpa [#allocation3], 0  ;;  %v493_v28 = vpack.c.bf16 %v88_v22, %v87_v21  ;;  %v189_v29 = vcombine.high %v187_v27, %v187_v27  ;;  %v495_v30 = vpack.c.bf16 %v106_v24, %v105_v23  ;;  %v89_v31 = vld [vmem:[%s717_s0 + $0x40] sm:$0xff]  ;;  %v90_v32 = vld [vmem:[%s717_s0 + $0x48] sm:$0xff]  ;;  %181 = vmatprep.mubr.f32.mxu0 %v115_v26  ;;  %vm79_vm0 = vcmask 519168  }
   0xc   :  { %v107_v33 = vld [vmem:[%s717_s0 + $0xd0] sm:$0xff]  ;;  %v108_v34 = vld [vmem:[%s717_s0 + $0xd8] sm:$0xff]  ;;  %v497_v35 = vpack.c.bf16 %v90_v32, %v89_v31  ;;  %v109_v39 = vld [vmem:[%s717_s0 + $0xe0] sm:$0xff]  ;;  %v575_v52 = vmov 0.0   ;;  %vm370_vm7 = vcmask 1040384   ;;  %vm372_vm8 = vcmask 1041408  }
   0xd   :  { %490 = vmatpush3.bf16.msra.mxu0 %v489_v19  ;;  %522 = vmatpush3.bf16.msra.mxu1 %v489_v19  ;;  %v499_v36 = vpack.c.bf16 %v108_v34, %v107_v33  ;;  %v91_v37 = vld [vmem:[%s717_s0 + $0x50] sm:$0xff]  ;;  %v92_v38 = vld [vmem:[%s717_s0 + $0x58] sm:$0xff]  ;;  %v110_v40 = vld [vmem:[%s717_s0 + $0xe8] sm:$0xff]  ;;  %80 = vst.msk [vmem:[#allocation2] sm:$0xf] %vm79_vm0, %v575_v52  ;;  %vm374_vm9 = vcmask 1042432  }
   0xe   :  { %492 = vmatprep.subr.bf16.mxu0 %v491_v20  ;;  %524 = vmatprep.subr.bf16.mxu1 %v491_v20  ;;  %v501_v41 = vpack.c.bf16 %v92_v38, %v91_v37  ;;  %v503_v42 = vpack.c.bf16 %v110_v40, %v109_v39  ;;  %v93_v43 = vld [vmem:[%s717_s0 + $0x60] sm:$0xff]  ;;  %v94_v44 = vld [vmem:[%s717_s0 + $0x68] sm:$0xff]  ;;  %v111_v45 = vld [vmem:[%s717_s0 + $0xf0] sm:$0xff] }
   0xf   :  { %255 = vmatprep.mubr.f32.mxu1 %v189_v29  ;;  %v112_v46 = vld [vmem:[%s717_s0 + $0xf8] sm:$0xff]  ;;  %v505_v47 = vpack.c.bf16 %v94_v44, %v93_v43  ;;  %v95_v49 = vld [vmem:[%s717_s0 + $0x70] sm:$0xff] }
  0x10   :  { %v507_v48 = vpack.c.bf16 %v112_v46, %v111_v45  ;;  %v96_v50 = vld [vmem:[%s717_s0 + $0x78] sm:$0xff]  ;;  %s576_s0 = smov [#allocation2]  }
  0x11   :  { %494 = vmatpush3.bf16.msra.mxu0 %v493_v28  ;;  %526 = vmatpush3.bf16.msra.mxu1 %v493_v28  ;;  %v509_v51 = vpack.c.bf16 %v96_v50, %v95_v49  ;;  %s385_s24 = sshll.u32 %s576_s0, 4  ;;  %s386_s24 = int_to_ptr.vmem [resolvable:$true] %s385_s24 }
  0x12   :  { %496 = vmatprep.subr.bf16.mxu0 %v495_v30  ;;  %528 = vmatprep.subr.bf16.mxu1 %v495_v30  ;;  %s551_s25 = scalar_lea.vmem %s386_s24, 64  ;;  %p556_p1 = scmp.lt.s32.totalorder %s386_s24, %s386_s24 }
  0x13   :  { %p552_p0 = scmp.ne.s32.totalorder %s386_s24, %s551_s25  ;;  %p557_p2 = scmp.lt.s32.totalorder %s551_s25, %s551_s25 }
  0x15   :  { %498 = vmatpush3.bf16.msra.mxu0 %v497_v35  ;;  %530 = vmatpush3.bf16.msra.mxu1 %v497_v35  ;;  %p558_p3 = por %p557_p2, %p556_p1 }
  0x16   :  { %500 = vmatprep.subr.bf16.mxu0 %v499_v36  ;;  %532 = vmatprep.subr.bf16.mxu1 %v499_v36 }
  0x17   :  { %p559_p4 = pnand %p558_p3, %p552_p0 }
  0x19   :  { %502 = vmatpush3.bf16.msra.mxu0 %v501_v41  ;;  %534 = vmatpush3.bf16.msra.mxu1 %v501_v41 }
  0x1a   :  { %504 = vmatprep.subr.bf16.mxu0 %v503_v42  ;;  %536 = vmatprep.subr.bf16.mxu1 %v503_v42 }
  0x1d   :  { %506 = vmatpush3.bf16.msra.mxu0 %v505_v47  ;;  %538 = vmatpush3.bf16.msra.mxu1 %v505_v47 }
  0x1e   :  { %508 = vmatprep.subr.bf16.mxu0 %v507_v48  ;;  %540 = vmatprep.subr.bf16.mxu1 %v507_v48 }
  0x21   :  { %510 = vmatpush3.bf16.msra.mxu0 %v509_v51  ;;  %542 = vmatpush3.bf16.msra.mxu1 %v509_v51 }
  0x24   :  { %182 = vmatmul.mubr.f32.vlgmr.msra.gmra.mrb[0].mxu0 %v113_v25  ;;  %256 = vmatmul.mubr.f32.vlgmr.msra.gmra.mrb[0].mxu1 %v187_v27 }
  0xf7   :  { %v441_v53 = vpop.f32.mrb[0].mxu0  ;;  %v476_v54 = vpop.f32.mrb[0].mxu1 }
  0xf8   :  { %v442_v55 = vpop.f32.mrb[1].mxu0  ;;  %v477_v56 = vpop.f32.mrb[1].mxu1 }
  0xf9   :  { %v443_v57 = vadd.f32 %v442_v55, %v441_v53  ;;  %v478_v58 = vadd.f32 %v477_v56, %v476_v54 }
  0xfb   :  { %v261_v59 = vmul.f32 0.63661975, %v443_v57  ;;  %v301_v60 = vmul.f32 0.63661975, %v478_v58 }
  0xfd   :  { %v262_v61 = vadd.f32 0.5, %v261_v59  ;;  %v302_v62 = vadd.f32 0.5, %v301_v60 }
  0xff   :  { %v263_v63 = vfloor.f32 %v262_v61  ;;  %v303_v0 = vfloor.f32 %v302_v62 }
 0x101   :  { %v265_v1 = vmul.f32 1.5703125, %v263_v63  ;;  %v305_v2 = vmul.f32 1.5703125, %v303_v0  ;;  %v267_v4 = vmul.f32 0.0004837513, %v263_v63  ;;  %v307_v6 = vmul.f32 0.0004837513, %v303_v0 }
 0x102   :  { %v269_v8 = vmul.f32 7.54979e-08, %v263_v63  ;;  %v309_v10 = vmul.f32 7.54979e-08, %v303_v0  ;;  %v543_v17 = vtrunc.f32 %v263_v63  ;;  %v545_v22 = vtrunc.f32 %v303_v0 }
 0x103   :  { %v266_v3 = vsub.f32 %v443_v57, %v265_v1  ;;  %v306_v5 = vsub.f32 %v478_v58, %v305_v2 }
 0x104   :  { %v544_v27 = vcvt.f32.s32 %v543_v17  ;;  %v546_v32 = vcvt.f32.s32 %v545_v22 }
 0x105   :  { %v268_v7 = vsub.f32 %v266_v3, %v267_v4  ;;  %v308_v9 = vsub.f32 %v306_v5, %v307_v6 }
 0x106   :  { %v288_v37 = vand.u32 1, %v544_v27  ;;  %v296_v43 = vadd.s32 1, %v544_v27  ;;  %v336_v47 = vadd.s32 1, %v546_v32  ;;  %v328_v49 = vand.u32 1, %v546_v32 }
 0x107   :  { %v270_v11 = vsub.f32 %v268_v7, %v269_v8  ;;  %v310_v12 = vsub.f32 %v308_v9, %v309_v10  ;;  %v292_v50 = vand.u32 2, %v544_v27  ;;  %v332_v55 = vand.u32 2, %v546_v32 }
 0x108   :  { %v297_v54 = vand.u32 2, %v296_v43  ;;  %vm289_vm1 = vcmp.ne.s32.totalorder %v288_v37, 0  ;;  %v337_v58 = vand.u32 2, %v336_v47  ;;  %vm329_vm2 = vcmp.ne.s32.totalorder %v328_v49, 0 }
 0x109   :  { %v271_v13 = vmul.f32 %v270_v11, %v270_v11  ;;  %v311_v14 = vmul.f32 %v310_v12, %v310_v12  ;;  %vm293_vm3 = vcmp.ne.s32.totalorder %v292_v50, 0  ;;  %vm333_vm5 = vcmp.ne.s32.totalorder %v332_v55, 0 }
 0x10a   :  { %vm298_vm4 = vcmp.ne.s32.totalorder %v297_v54, 0  ;;  %vm338_vm6 = vcmp.ne.s32.totalorder %v337_v58, 0 }
 0x10b   :  { %v272_v15 = vmul.f32 -0.00019515296, %v271_v13  ;;  %v279_v16 = vmul.f32 2.4433157e-05, %v271_v13  ;;  %v312_v18 = vmul.f32 -0.00019515296, %v311_v14 }
 0x10c   :  { %v319_v19 = vmul.f32 2.4433157e-05, %v311_v14  ;;  %v285_v42 = vmul.f32 0.5, %v271_v13  ;;  %v325_v46 = vmul.f32 0.5, %v311_v14 }
 0x10d   :  { %v273_v20 = vadd.f32 0.008332161, %v272_v15  ;;  %v406_v21 = vadd.f32 -0.0013887316, %v279_v16  ;;  %v313_v23 = vadd.f32 0.008332161, %v312_v18 }
 0x10e   :  { %v408_v24 = vadd.f32 -0.0013887316, %v319_v19 }
 0x10f   :  { %v274_v25 = vmul.f32 %v273_v20, %v271_v13  ;;  %v281_v26 = vmul.f32 %v406_v21, %v271_v13  ;;  %v314_v28 = vmul.f32 %v313_v23, %v311_v14 }
 0x110   :  { %v321_v29 = vmul.f32 %v408_v24, %v311_v14 }
 0x111   :  { %v405_v30 = vadd.f32 -0.16666655, %v274_v25  ;;  %v282_v31 = vadd.f32 0.041666646, %v281_v26  ;;  %v407_v33 = vadd.f32 -0.16666655, %v314_v28 }
 0x112   :  { %v322_v34 = vadd.f32 0.041666646, %v321_v29 }
 0x113   :  { %v276_v35 = vmul.f32 %v405_v30, %v271_v13  ;;  %v283_v36 = vmul.f32 %v282_v31, %v271_v13  ;;  %v316_v38 = vmul.f32 %v407_v33, %v311_v14 }
 0x114   :  { %v323_v39 = vmul.f32 %v322_v34, %v311_v14 }
 0x115   :  { %v277_v40 = vmul.f32 %v276_v35, %v270_v11  ;;  %v284_v41 = vmul.f32 %v283_v36, %v271_v13  ;;  %v317_v44 = vmul.f32 %v316_v38, %v310_v12  ;;  %v376_v36 = vld [vmem:[#allocation2] sm:$0xf] }
 0x116   :  { %v324_v45 = vmul.f32 %v323_v39, %v311_v14 }
 0x117   :  { %v286_v48 = vsub.f32 %v284_v41, %v285_v42  ;;  %v278_v52 = vadd.f32 %v277_v40, %v270_v11  ;;  %v318_v56 = vadd.f32 %v317_v44, %v310_v12 }
 0x118   :  { %v326_v51 = vsub.f32 %v324_v45, %v325_v46 }
 0x119   :  { %v287_v53 = vadd.f32 1.0, %v286_v48 }
 0x11a   :  { %v327_v57 = vadd.f32 1.0, %v326_v51 }
 0x11b   :  { %v290_v59 = vsel %vm289_vm1, %v287_v53, %v278_v52  ;;  %v291_v60 = vsel %vm289_vm1, %v278_v52, %v287_v53 }
 0x11c   :  { %v294_v61 = vsub.f32 0.0, %v290_v59  ;;  %v299_v62 = vsub.f32 0.0, %v291_v60  ;;  %v330_v63 = vsel %vm329_vm2, %v327_v57, %v318_v56  ;;  %v331_v0 = vsel %vm329_vm2, %v318_v56, %v327_v57 }
 0x11d   :  { %v334_v1 = vsub.f32 0.0, %v330_v63  ;;  %v339_v2 = vsub.f32 0.0, %v331_v0 }
 0x11e   :  { %v295_v3 = vsel %vm293_vm3, %v294_v61, %v290_v59  ;;  %v300_v4 = vsel %vm298_vm4, %v299_v62, %v291_v60 }
 0x11f   :  { %v335_v5 = vsel %vm333_vm5, %v334_v1, %v330_v63  ;;  %v340_v6 = vsel %vm338_vm6, %v339_v2, %v331_v0  ;;  %v342_v7 = vsel %vm79_vm0, %v300_v4, 0.0  ;;  %v349_v8 = vsel %vm79_vm0, %v295_v3, 0.0 }
 0x120   :  { %v343_v9 = vrot.slane %v342_v7, 4  ;;  %v350_v10 = vrot.slane %v349_v8, 4  ;;  %v356_v11 = vsel %vm79_vm0, %v340_v6, 0.0  ;;  %v363_v12 = vsel %vm79_vm0, %v335_v5, 0.0 }
 0x121   :  { %v357_v13 = vrot.slane %v356_v11, 4  ;;  %v364_v14 = vrot.slane %v363_v12, 4 }
 0x122   :  { %v344_v15 = vadd.f32 %v343_v9, %v342_v7  ;;  %v351_v16 = vadd.f32 %v350_v10, %v349_v8 }
 0x123   :  { %v358_v17 = vadd.f32 %v357_v13, %v356_v11  ;;  %v365_v18 = vadd.f32 %v364_v14, %v363_v12 }
 0x124   :  { %v345_v19 = vrot.slane %v344_v15, 2  ;;  %v352_v20 = vrot.slane %v351_v16, 2 }
 0x125   :  { %v359_v21 = vrot.slane %v358_v17, 2  ;;  %v366_v22 = vrot.slane %v365_v18, 2 }
 0x126   :  { %v346_v23 = vadd.f32 %v345_v19, %v344_v15  ;;  %v353_v24 = vadd.f32 %v352_v20, %v351_v16 }
 0x127   :  { %v360_v25 = vadd.f32 %v359_v21, %v358_v17  ;;  %v367_v26 = vadd.f32 %v366_v22, %v365_v18 }
 0x128   :  { %v347_v27 = vrot.slane %v346_v23, 1  ;;  %v354_v28 = vrot.slane %v353_v24, 1 }
 0x129   :  { %v361_v29 = vrot.slane %v360_v25, 1  ;;  %v368_v30 = vrot.slane %v367_v26, 1 }
 0x12a   :  { %v348_v31 = vadd.f32 %v347_v27, %v346_v23  ;;  %v355_v32 = vadd.f32 %v354_v28, %v353_v24 }
 0x12b   :  { %v362_v33 = vadd.f32 %v361_v29, %v360_v25  ;;  %v369_v34 = vadd.f32 %v368_v30, %v367_v26 }
 0x12c   :  { %v371_v35 = vsel %vm370_vm7, %v348_v31, %v355_v32 }
 0x12d   :  { %v373_v37 = vsel %vm372_vm8, %v371_v35, %v362_v33 }
 0x12e   :  { %v375_v38 = vsel %vm374_vm9, %v373_v37, %v369_v34 }
 0x12f   :  { %v377_v39 = vadd.f32 %v376_v36, %v375_v38 }
 0x131   :  { %378 = vst.msk [vmem:[#allocation2] sm:$0xf] %vm79_vm0, %v377_v39 }
 0x132   :  { %562 = shalt.err (!%p559_p4)
}
 0x133   :  { %s563_s28 = scalar_lea.hbm %s720_s3, 64 }
 0x134   :  { %p564_p5 = scmp.ne.s32.totalorder %s720_s3, %s563_s28  ;;  %p567_p6 = scmp.lt.u32.totalorder %s563_s28, %s720_s3 }
 0x136   :  { %p569_p7 = pnand %p567_p6, %p564_p5 }
 0x138   :  { %572 = shalt.err (!%p569_p7)
}
 0x139   :  { %388 = dma.vmem_to_hbm [thread:$0]  %s386_s24, 64, %s720_s3, [#allocation3]  }
 0x13a   :  { %573 = dma.done.wait [#allocation3], 64  }
 0x13b   :  { %574 = vsyncadd [#allocation3], 4294967232 }
 0x13c   :  { %392 = vsyncpa [#allocation3], 1 }

</bundles_post_ra>
